<compile_context>
chip_gen: v7x
topology: tpu7x:2x2x1
jax: 0.10.0
libtpu: 0.0.40
codegen_flags: <defaults>
</compile_context>

<pallas_src>
import functools

import jax
import jax.numpy as jnp
from jax.experimental import pallas as pl
from jax.experimental.pallas import tpu as pltpu

LANES = 128   # vreg lane width; every feature dim is zero-padded to this
SUB = 8       # sublane count
VMEM_SPEC = pl.BlockSpec(memory_space=pltpu.MemorySpace.VMEM)


def _pad2(x, rows, cols):
    return jnp.pad(x, ((0, rows - x.shape[0]), (0, cols - x.shape[1])))


# -----------------------------------------------------------------------------
# Fused kernel: title branch + full branch + folded head, all in VMEM.
# -----------------------------------------------------------------------------
def _fused_kernel(idx_cur_ref, idx_nxt_ref, cat_ref,
                  w_emb_ref, w_ref, b_ref,
                  o_ref, shift_buf,
                  *, B, B_pad, Lt, Lf):
    f32 = jnp.float32
    bf16 = jnp.bfloat16
    rows_t = B * Lt
    rows_f = B * Lf
    rows_all = rows_t + rows_f
    nt2 = w_emb_ref.shape[0]
    n_tok = nt2 // 2

    # Biases / BN affine: 8-sublane-aligned rows of the single f32 bias slab.
    bt, bf1, bn_g, bn_b, bf2, b_head, fin_b = [
        b_ref[8 * k:8 * k + 1, :] for k in range(7)]

    # Weights: 128-row-aligned static views of the single bf16 weight slab.
    wf2 = w_ref[0:128, :]
    wt_h = w_ref[128:256, :]
    wf_h = w_ref[256:384, :]
    wc_h = w_ref[384:512, :]
    w_fin = w_ref[512:640, :]

    # ---- Embedding + first convs (title & full) as ONE one-hot MXU matmul.
    # RHS is 256 lanes wide: cols [0,128) = title emb@taps, [128,256) = full.
    iota = jax.lax.broadcasted_iota(jnp.int32, (rows_all, nt2), 1)
    oh = ((iota == idx_cur_ref[...]) |
          (iota == idx_nxt_ref[...] + n_tok)).astype(f32).astype(bf16)
    r = jnp.dot(oh, w_emb_ref[...], preferred_element_type=f32)  # (rows_all,256)

    y_t = jnp.maximum(r[:rows_t, :LANES] + bt, 0.0)              # (rows_t, 128)
    y1 = jnp.maximum(r[rows_t:, LANES:] + bf1, 0.0)              # (rows_f, 128)

    # ---- title: ReLU -> AdaptiveAvgPool1d(1) via an in-kernel masked pool.
    bi_t = jax.lax.broadcasted_iota(jnp.int32, (B_pad, rows_t), 0)
    ri_t = jax.lax.broadcasted_iota(jnp.int32, (B_pad, rows_t), 1)
    pool_t = ((ri_t >= bi_t * Lt) & (ri_t < bi_t * Lt + (Lt - 1))).astype(f32)
    title = jnp.dot(pool_t, y_t, preferred_element_type=f32) * (1.0 / (Lt - 1))

    # ---- full: BatchNorm1d (training-mode batch stats, biased var, eps=1e-5)
    # over the valid conv1 rows; two-pass masked mean/var in f32.
    ri_f = jax.lax.broadcasted_iota(jnp.int32, (rows_f, LANES), 0)
    bn_mask = functools.reduce(
        jnp.logical_or,
        [(ri_f >= b * Lf) & (ri_f < b * Lf + (Lf - 1)) for b in range(B)],
    ).astype(f32)
    inv_cnt = 1.0 / (B * (Lf - 1))
    mean = jnp.sum(y1 * bn_mask, axis=0, keepdims=True) * inv_cnt
    diff = (y1 - mean) * bn_mask
    var = jnp.sum(diff * diff, axis=0, keepdims=True) * inv_cnt
    y1 = (y1 - mean) * jax.lax.rsqrt(var + 1e-5) * bn_g + bn_b

    # ---- conv2: next-position rows via VMEM scratch + 1-row-offset read
    # (no MXU shift matmul). tap1 channels go to the upper lane half with a
    # direction-agnostic half-width (64-lane) rotate.
    shift_buf[...] = jnp.zeros(shift_buf.shape, f32)
    shift_buf[0:rows_f, :] = y1
    y1_next = shift_buf[1:rows_f + 1, :]
    y1_cat = (y1 + pltpu.roll(y1_next, LANES // 2, axis=1)).astype(bf16)
    y2 = jnp.maximum(jnp.dot(y1_cat, wf2, preferred_element_type=f32) + bf2, 0.0)

    bi_f = jax.lax.broadcasted_iota(jnp.int32, (B_pad, rows_f), 0)
    rj_f = jax.lax.broadcasted_iota(jnp.int32, (B_pad, rows_f), 1)
    pool_f = ((rj_f >= bi_f * Lf) & (rj_f < bi_f * Lf + (Lf - 2))).astype(f32)
    full = jnp.dot(pool_f, y2, preferred_element_type=f32) * (1.0 / (Lf - 2))

    # ---- head: category chain / post_concat / inter_dense folded offline.
    h = (jnp.dot(title.astype(bf16), wt_h, preferred_element_type=f32)
         + jnp.dot(full.astype(bf16), wf_h, preferred_element_type=f32)
         + jnp.dot(cat_ref[...].astype(bf16), wc_h, preferred_element_type=f32)
         + b_head)
    h = jnp.maximum(h, 0.0)
    out = jnp.dot(h.astype(bf16), w_fin, preferred_element_type=f32) + fin_b
    o_ref[...] = out   # lane-dense, full-sublane (B_pad, 128) store


# -----------------------------------------------------------------------------
# Parameter preparation (offline): fold embeddings into conv-1 taps, fold the
# activation-free head chain, pack everything into bf16/f32 slabs.
# -----------------------------------------------------------------------------
def prepare_params(p):
    H = p["t_w0"].shape[0]
    n_tok = p["title_emb"].shape[0]
    ncat = p["c1_w"].shape[0]
    assert 2 * H <= LANES // 2, "conv2 tap packing assumes 2*hid_size <= 64"
    assert ncat <= LANES

    f32 = jnp.float32
    # Embedding folded into conv-1 taps; title | full side by side (256 lanes).
    wt = jnp.concatenate([p["title_emb"] @ p["t_w0"],
                          p["title_emb"] @ p["t_w1"]], axis=0)       # (2n_tok, H)
    wf1 = jnp.concatenate([p["full_emb"] @ p["f1_w0"],
                           p["full_emb"] @ p["f1_w1"]], axis=0)      # (2n_tok, 2H)
    w_emb = jnp.concatenate([_pad2(wt, 2 * n_tok, LANES),
                             _pad2(wf1, 2 * n_tok, LANES)], axis=1)  # (2n_tok, 256)

    # conv2 taps stacked along K: tap0 reads lanes [0,2H), tap1 lanes [64,64+2H).
    wf2 = jnp.zeros((LANES, LANES), f32)
    wf2 = wf2.at[:2 * H, :2 * H].set(p["f2_w0"])
    wf2 = wf2.at[LANES // 2:LANES // 2 + 2 * H, :2 * H].set(p["f2_w1"])

    # Fold category chain, post_concat and inter_dense (no activations between).
    c_w = p["c1_w"] @ p["c2_w"]
    c_b = p["c1_b"] @ p["c2_w"] + p["c2_b"]
    wt_h = p["post_w"][:H] @ p["inter_w"]
    wf_h = p["post_w"][H:3 * H] @ p["inter_w"]
    wc_h = c_w @ p["post_w"][3 * H:] @ p["inter_w"]
    b_h = (c_b @ p["post_w"][3 * H:] + p["post_b"]) @ p["inter_w"] + p["inter_b"]

    # One bf16 weight slab (aligned 128-row blocks).
    w_slab = jnp.concatenate([
        wf2,
        _pad2(wt_h, LANES, LANES),
        _pad2(wf_h, LANES, LANES),
        _pad2(wc_h, LANES, LANES),
        _pad2(p["fin_w"], LANES, LANES),
    ], axis=0).astype(jnp.bfloat16)

    # One f32 bias/affine slab, each row 8-sublane aligned.
    rows = [p["t_b"], p["f1_b"], p["bn_g"], p["bn_b"], p["f2_b"], b_h, p["fin_b"]]
    b_slab = jnp.zeros((8 * 8, LANES), f32)
    for k, row in enumerate(rows):
        b_slab = b_slab.at[8 * k:8 * k + 1, :row.shape[1]].set(row)

    return {"w_emb": w_emb.astype(jnp.bfloat16), "w_slab": w_slab, "b_slab": b_slab}


# -----------------------------------------------------------------------------
# Forward wrapper: builds the tiny index vectors, launches the fused kernel.
# -----------------------------------------------------------------------------
def three_inputs_net_forward(kparams, input1, input2, input3):
    B, Lt = input1.shape
    _, Lf = input2.shape
    assert Lt >= 2 and Lf >= 3
    B_pad = ((B + SUB - 1) // SUB) * SUB
    rows_t, rows_f = B * Lt, B * Lf

    def idx_pair(tok):
        L = tok.shape[1]
        nxt = jnp.concatenate([tok[:, 1:], jnp.zeros((B, 1), tok.dtype)], axis=1)
        return (tok.reshape(B * L, 1).astype(jnp.int32),
                nxt.reshape(B * L, 1).astype(jnp.int32))

    t_idx, t_nidx = idx_pair(input1)
    f_idx, f_nidx = idx_pair(input2)
    idx_cur = jnp.concatenate([t_idx, f_idx], axis=0)
    idx_nxt = jnp.concatenate([t_nidx, f_nidx], axis=0)
    cat_pad = _pad2(input3.astype(jnp.float32), B_pad, LANES)

    nt2 = kparams["w_emb"].shape[0]
    flops = 2 * ((rows_t + rows_f) * nt2 * 2 * LANES     # emb + conv1 (merged)
                 + rows_f * LANES * LANES                # conv2
                 + B_pad * rows_t * LANES                # title pool
                 + B_pad * rows_f * LANES                # full pool
                 + 4 * B_pad * LANES * LANES)            # head
    bytes_accessed = (kparams["w_emb"].size * 2 + kparams["w_slab"].size * 2
                      + kparams["b_slab"].size * 4
                      + (idx_cur.size + idx_nxt.size) * 4
                      + cat_pad.size * 4 + B_pad * LANES * 4)
    cost = pl.CostEstimate(flops=int(flops), transcendentals=2 * LANES,
                           bytes_accessed=int(bytes_accessed))

    kernel = functools.partial(_fused_kernel, B=B, B_pad=B_pad, Lt=Lt, Lf=Lf)
    args = (idx_cur, idx_nxt, cat_pad,
            kparams["w_emb"], kparams["w_slab"], kparams["b_slab"])

    out_pad = pl.pallas_call(
        kernel,
        out_shape=jax.ShapeDtypeStruct((B_pad, LANES), jnp.float32),
        in_specs=[VMEM_SPEC] * len(args),
        out_specs=VMEM_SPEC,
        scratch_shapes=[pltpu.VMEM((rows_f + SUB, LANES), jnp.float32)],
        cost_estimate=cost,
    )(*args)
    return out_pad[:B, :1]


# -----------------------------------------------------------------------------
# Plain-JAX reference (mirrors the PyTorch module) and parameter init.
# -----------------------------------------------------------------------------
def reference_forward(params, input1, input2, input3):
    def conv_k2(x, w0, w1, b):   # x: (B, L, Cin) channels-last
        return (jnp.einsum("bli,io->blo", x[:, :-1, :], w0)
                + jnp.einsum("bli,io->blo", x[:, 1:, :], w1) + b)

    t = jnp.take(params["title_emb"], input1, axis=0)
    f = jnp.take(params["full_emb"], input2, axis=0)

    yt = jax.nn.relu(conv_k2(t, params["t_w0"], params["t_w1"], params["t_b"]))
    title = jnp.mean(yt, axis=1)

    y1 = jax.nn.relu(conv_k2(f, params["f1_w0"], params["f1_w1"], params["f1_b"]))
    mean = jnp.mean(y1, axis=(0, 1), keepdims=True)
    var = jnp.mean((y1 - mean) ** 2, axis=(0, 1), keepdims=True)
    y1 = (y1 - mean) * jax.lax.rsqrt(var + 1e-5) * params["bn_g"][None] + params["bn_b"][None]
    y2 = jax.nn.relu(conv_k2(y1, params["f2_w0"], params["f2_w1"], params["f2_b"]))
    full = jnp.mean(y2, axis=1)

    cat = input3 @ params["c1_w"] + params["c1_b"]
    cat = cat @ params["c2_w"] + params["c2_b"]
    concat = jnp.concatenate([title, full, cat], axis=1)
    out = concat @ params["post_w"] + params["post_b"]
    out = out @ params["inter_w"] + params["inter_b"]
    return jax.nn.relu(out) @ params["fin_w"] + params["fin_b"]


def init_params(key, n_tokens, n_cat_features, concat_number_of_features, hid_size):
    keys = jax.random.split(key, 20)

    def rnd(k, shape, scale=0.1):
        return jax.random.normal(k, shape, dtype=jnp.float32) * scale

    H = hid_size
    return {
        "title_emb": rnd(keys[0], (n_tokens, H), 1.0),
        "full_emb": rnd(keys[1], (n_tokens, H), 1.0),
        "t_w0": rnd(keys[2], (H, H)), "t_w1": rnd(keys[3], (H, H)), "t_b": rnd(keys[4], (1, H)),
        "f1_w0": rnd(keys[5], (H, 2 * H)), "f1_w1": rnd(keys[6], (H, 2 * H)), "f1_b": rnd(keys[7], (1, 2 * H)),
        "bn_g": jnp.ones((1, 2 * H), jnp.float32), "bn_b": jnp.zeros((1, 2 * H), jnp.float32),
        "f2_w0": rnd(keys[8], (2 * H, 2 * H)), "f2_w1": rnd(keys[9], (2 * H, 2 * H)), "f2_b": rnd(keys[10], (1, 2 * H)),
        "c1_w": rnd(keys[11], (n_cat_features, n_cat_features)), "c1_b": rnd(keys[12], (1, n_cat_features)),
        "c2_w": rnd(keys[13], (n_cat_features, n_cat_features)), "c2_b": rnd(keys[14], (1, n_cat_features)),
        "post_w": rnd(keys[15], (3 * H + n_cat_features, concat_number_of_features)),
        "post_b": rnd(keys[16], (1, concat_number_of_features)),
        "inter_w": rnd(keys[17], (concat_number_of_features, 2 * H)),
        "inter_b": rnd(keys[18], (1, 2 * H)),
        "fin_w": rnd(keys[19], (2 * H, 1)),
        "fin_b": jnp.zeros((1, 1), jnp.float32),
    }


if __name__ == "__main__":
    n_tokens = 64
    n_cat_features = 8
    concat_number_of_features = 40
    hid_size = 32
    B, Lt, Lf = 4, 8, 10

    key = jax.random.PRNGKey(0)
    kp_key, k1, k2, k3 = jax.random.split(key, 4)
    params = init_params(kp_key, n_tokens, n_cat_features,
                         concat_number_of_features, hid_size)
    kparams = prepare_params(params)

    input1 = jax.random.randint(k1, (B, Lt), 0, n_tokens, dtype=jnp.int32)
    input2 = jax.random.randint(k2, (B, Lf), 0, n_tokens, dtype=jnp.int32)
    input3 = jax.random.normal(k3, (B, n_cat_features), dtype=jnp.float32)

    fwd = jax.jit(three_inputs_net_forward)
    out = jax.block_until_ready(fwd(kparams, input1, input2, input3))
    assert out.shape == (B, 1) and out.dtype == jnp.float32

    ref = jax.block_until_ready(reference_forward(params, input1, input2, input3))
    assert jnp.allclose(out, ref, atol=3e-2, rtol=3e-2), (out, ref)
    print("KERNEL_OK")
</pallas_src>

<mosaic_0001>
module attributes {stable_mosaic.version = 11 : i64} {
  func.func @_fused_kernel(%arg0: memref<72x1xi32, #tpu.memory_space<vmem>>, %arg1: memref<72x1xi32, #tpu.memory_space<vmem>>, %arg2: memref<8x128xf32, #tpu.memory_space<vmem>>, %arg3: memref<128x256xbf16, #tpu.memory_space<vmem>>, %arg4: memref<640x128xbf16, #tpu.memory_space<vmem>>, %arg5: memref<64x128xf32, #tpu.memory_space<vmem>>, %arg6: memref<8x128xf32, #tpu.memory_space<vmem>>, %arg7: memref<48x128xf32, #tpu.memory_space<vmem>>) attributes {dimension_semantics = [], scalar_prefetch = 0 : i64, scratch_operands = 1 : i64, tpu.core_type = #tpu.core_type<tc>} {
    %c0 = arith.constant 0 : index
    %c0_0 = arith.constant 0 : index
    %0 = vector.load %arg5[%c0, %c0_0] : memref<64x128xf32, #tpu.memory_space<vmem>>, vector<1x128xf32>
    %c8 = arith.constant 8 : index
    %c0_1 = arith.constant 0 : index
    %1 = vector.load %arg5[%c8, %c0_1] : memref<64x128xf32, #tpu.memory_space<vmem>>, vector<1x128xf32>
    %c16 = arith.constant 16 : index
    %c0_2 = arith.constant 0 : index
    %2 = vector.load %arg5[%c16, %c0_2] : memref<64x128xf32, #tpu.memory_space<vmem>>, vector<1x128xf32>
    %c24 = arith.constant 24 : index
    %c0_3 = arith.constant 0 : index
    %3 = vector.load %arg5[%c24, %c0_3] : memref<64x128xf32, #tpu.memory_space<vmem>>, vector<1x128xf32>
    %c32 = arith.constant 32 : index
    %c0_4 = arith.constant 0 : index
    %4 = vector.load %arg5[%c32, %c0_4] : memref<64x128xf32, #tpu.memory_space<vmem>>, vector<1x128xf32>
    %c40 = arith.constant 40 : index
    %c0_5 = arith.constant 0 : index
    %5 = vector.load %arg5[%c40, %c0_5] : memref<64x128xf32, #tpu.memory_space<vmem>>, vector<1x128xf32>
    %c48 = arith.constant 48 : index
    %c0_6 = arith.constant 0 : index
    %6 = vector.load %arg5[%c48, %c0_6] : memref<64x128xf32, #tpu.memory_space<vmem>>, vector<1x128xf32>
    %c0_7 = arith.constant 0 : index
    %c0_8 = arith.constant 0 : index
    %7 = vector.load %arg4[%c0_7, %c0_8] : memref<640x128xbf16, #tpu.memory_space<vmem>>, vector<128x128xbf16>
    %c128 = arith.constant 128 : index
    %c0_9 = arith.constant 0 : index
    %8 = vector.load %arg4[%c128, %c0_9] : memref<640x128xbf16, #tpu.memory_space<vmem>>, vector<128x128xbf16>
    %c256 = arith.constant 256 : index
    %c0_10 = arith.constant 0 : index
    %9 = vector.load %arg4[%c256, %c0_10] : memref<640x128xbf16, #tpu.memory_space<vmem>>, vector<128x128xbf16>
    %c384 = arith.constant 384 : index
    %c0_11 = arith.constant 0 : index
    %10 = vector.load %arg4[%c384, %c0_11] : memref<640x128xbf16, #tpu.memory_space<vmem>>, vector<128x128xbf16>
    %c512 = arith.constant 512 : index
    %c0_12 = arith.constant 0 : index
    %11 = vector.load %arg4[%c512, %c0_12] : memref<640x128xbf16, #tpu.memory_space<vmem>>, vector<128x128xbf16>
    %12 = tpu.iota {dimensions = array<i32: 1>} : vector<72x128xi32>
    %c0_13 = arith.constant 0 : index
    %c0_14 = arith.constant 0 : index
    %13 = vector.load %arg0[%c0_13, %c0_14] : memref<72x1xi32, #tpu.memory_space<vmem>>, vector<72x1xi32>
    %14 = vector.broadcast %13 : vector<72x1xi32> to vector<72x128xi32>
    %15 = arith.cmpi eq, %12, %14 : vector<72x128xi32>
    %c0_15 = arith.constant 0 : index
    %c0_16 = arith.constant 0 : index
    %16 = vector.load %arg1[%c0_15, %c0_16] : memref<72x1xi32, #tpu.memory_space<vmem>>, vector<72x1xi32>
    %c64_i32 = arith.constant 64 : i32
    %17 = vector.broadcast %c64_i32 : i32 to vector<72x1xi32>
    %18 = arith.addi %16, %17 : vector<72x1xi32>
    %19 = vector.broadcast %18 : vector<72x1xi32> to vector<72x128xi32>
    %20 = arith.cmpi eq, %12, %19 : vector<72x128xi32>
    %21 = arith.ori %15, %20 : vector<72x128xi1>
    %22 = arith.extui %21 : vector<72x128xi1> to vector<72x128xi32>
    %23 = arith.sitofp %22 : vector<72x128xi32> to vector<72x128xf32>
    %24 = arith.truncf %23 : vector<72x128xf32> to vector<72x128xbf16>
    %c0_17 = arith.constant 0 : index
    %c0_18 = arith.constant 0 : index
    %25 = vector.load %arg3[%c0_17, %c0_18] : memref<128x256xbf16, #tpu.memory_space<vmem>>, vector<128x256xbf16>
    %cst = arith.constant dense<0.000000e+00> : vector<72x256xf32>
    %26 = tpu.matmul %24, %25, %cst {dimension_numbers = #tpu.dot_dimension_numbers<[1], [0], [0], [1], [0, 0, 1, 1], [], []>} : vector<72x128xbf16>, vector<128x256xbf16>, vector<72x256xf32> -> vector<72x256xf32>
    %27 = vector.extract_strided_slice %26 {offsets = [0, 0], sizes = [32, 128], strides = [1, 1]} : vector<72x256xf32> to vector<32x128xf32>
    %28 = vector.broadcast %0 : vector<1x128xf32> to vector<32x128xf32>
    %29 = arith.addf %27, %28 : vector<32x128xf32>
    %cst_19 = arith.constant 0.000000e+00 : f32
    %30 = vector.broadcast %cst_19 : f32 to vector<32x128xf32>
    %31 = arith.maximumf %29, %30 : vector<32x128xf32>
    %32 = vector.extract_strided_slice %26 {offsets = [32, 128], sizes = [40, 128], strides = [1, 1]} : vector<72x256xf32> to vector<40x128xf32>
    %33 = vector.broadcast %1 : vector<1x128xf32> to vector<40x128xf32>
    %34 = arith.addf %32, %33 : vector<40x128xf32>
    %cst_20 = arith.constant 0.000000e+00 : f32
    %35 = vector.broadcast %cst_20 : f32 to vector<40x128xf32>
    %36 = arith.maximumf %34, %35 : vector<40x128xf32>
    %37 = tpu.iota {dimensions = array<i32: 0>} : vector<8x32xi32>
    %38 = tpu.iota {dimensions = array<i32: 1>} : vector<8x32xi32>
    %c8_i32 = arith.constant 8 : i32
    %39 = vector.broadcast %c8_i32 : i32 to vector<8x32xi32>
    %40 = arith.muli %37, %39 : vector<8x32xi32>
    %41 = arith.cmpi sge, %38, %40 : vector<8x32xi32>
    %c8_i32_21 = arith.constant 8 : i32
    %42 = vector.broadcast %c8_i32_21 : i32 to vector<8x32xi32>
    %43 = arith.muli %37, %42 : vector<8x32xi32>
    %c7_i32 = arith.constant 7 : i32
    %44 = vector.broadcast %c7_i32 : i32 to vector<8x32xi32>
    %45 = arith.addi %43, %44 : vector<8x32xi32>
    %46 = arith.cmpi slt, %38, %45 : vector<8x32xi32>
    %47 = arith.andi %41, %46 : vector<8x32xi1>
    %48 = arith.extui %47 : vector<8x32xi1> to vector<8x32xi32>
    %49 = arith.sitofp %48 : vector<8x32xi32> to vector<8x32xf32>
    %cst_22 = arith.constant dense<0.000000e+00> : vector<8x128xf32>
    %50 = tpu.matmul %49, %31, %cst_22 {dimension_numbers = #tpu.dot_dimension_numbers<[1], [0], [0], [1], [0, 0, 1, 1], [], []>} : vector<8x32xf32>, vector<32x128xf32>, vector<8x128xf32> -> vector<8x128xf32>
    %cst_23 = arith.constant 0.142857149 : f32
    %51 = vector.broadcast %cst_23 : f32 to vector<8x128xf32>
    %52 = arith.mulf %50, %51 : vector<8x128xf32>
    %53 = tpu.iota {dimensions = array<i32: 0>} : vector<40x128xi32>
    %c0_i32 = arith.constant 0 : i32
    %54 = vector.broadcast %c0_i32 : i32 to vector<40x128xi32>
    %55 = arith.cmpi sge, %53, %54 : vector<40x128xi32>
    %c9_i32 = arith.constant 9 : i32
    %56 = vector.broadcast %c9_i32 : i32 to vector<40x128xi32>
    %57 = arith.cmpi slt, %53, %56 : vector<40x128xi32>
    %58 = arith.andi %55, %57 : vector<40x128xi1>
    %c10_i32 = arith.constant 10 : i32
    %59 = vector.broadcast %c10_i32 : i32 to vector<40x128xi32>
    %60 = arith.cmpi sge, %53, %59 : vector<40x128xi32>
    %c19_i32 = arith.constant 19 : i32
    %61 = vector.broadcast %c19_i32 : i32 to vector<40x128xi32>
    %62 = arith.cmpi slt, %53, %61 : vector<40x128xi32>
    %63 = arith.andi %60, %62 : vector<40x128xi1>
    %c20_i32 = arith.constant 20 : i32
    %64 = vector.broadcast %c20_i32 : i32 to vector<40x128xi32>
    %65 = arith.cmpi sge, %53, %64 : vector<40x128xi32>
    %c29_i32 = arith.constant 29 : i32
    %66 = vector.broadcast %c29_i32 : i32 to vector<40x128xi32>
    %67 = arith.cmpi slt, %53, %66 : vector<40x128xi32>
    %68 = arith.andi %65, %67 : vector<40x128xi1>
    %c30_i32 = arith.constant 30 : i32
    %69 = vector.broadcast %c30_i32 : i32 to vector<40x128xi32>
    %70 = arith.cmpi sge, %53, %69 : vector<40x128xi32>
    %c39_i32 = arith.constant 39 : i32
    %71 = vector.broadcast %c39_i32 : i32 to vector<40x128xi32>
    %72 = arith.cmpi slt, %53, %71 : vector<40x128xi32>
    %73 = arith.andi %70, %72 : vector<40x128xi1>
    %74 = arith.ori %58, %63 : vector<40x128xi1>
    %75 = arith.ori %74, %68 : vector<40x128xi1>
    %76 = arith.ori %75, %73 : vector<40x128xi1>
    %77 = arith.extui %76 : vector<40x128xi1> to vector<40x128xi32>
    %78 = arith.sitofp %77 : vector<40x128xi32> to vector<40x128xf32>
    %79 = arith.mulf %36, %78 : vector<40x128xf32>
    %cst_24 = arith.constant dense<0.000000e+00> : vector<128xf32>
    %80 = vector.multi_reduction <add>, %79, %cst_24 [0] : vector<40x128xf32> to vector<128xf32>
    %81 = vector.shape_cast %80 : vector<128xf32> to vector<1x128xf32>
    %cst_25 = arith.constant 0.027777778 : f32
    %82 = vector.broadcast %cst_25 : f32 to vector<1x128xf32>
    %83 = arith.mulf %81, %82 : vector<1x128xf32>
    %84 = vector.broadcast %83 : vector<1x128xf32> to vector<40x128xf32>
    %85 = arith.subf %36, %84 : vector<40x128xf32>
    %86 = arith.mulf %85, %78 : vector<40x128xf32>
    %87 = arith.mulf %86, %86 : vector<40x128xf32>
    %cst_26 = arith.constant dense<0.000000e+00> : vector<128xf32>
    %88 = vector.multi_reduction <add>, %87, %cst_26 [0] : vector<40x128xf32> to vector<128xf32>
    %89 = vector.shape_cast %88 : vector<128xf32> to vector<1x128xf32>
    %cst_27 = arith.constant 0.027777778 : f32
    %90 = vector.broadcast %cst_27 : f32 to vector<1x128xf32>
    %91 = arith.mulf %89, %90 : vector<1x128xf32>
    %92 = vector.broadcast %83 : vector<1x128xf32> to vector<40x128xf32>
    %93 = arith.subf %36, %92 : vector<40x128xf32>
    %cst_28 = arith.constant 9.99999974E-6 : f32
    %94 = vector.broadcast %cst_28 : f32 to vector<1x128xf32>
    %95 = arith.addf %91, %94 : vector<1x128xf32>
    %96 = math.rsqrt %95 : vector<1x128xf32>
    %97 = vector.broadcast %96 : vector<1x128xf32> to vector<40x128xf32>
    %98 = arith.mulf %93, %97 : vector<40x128xf32>
    %99 = vector.broadcast %2 : vector<1x128xf32> to vector<40x128xf32>
    %100 = arith.mulf %98, %99 : vector<40x128xf32>
    %101 = vector.broadcast %3 : vector<1x128xf32> to vector<40x128xf32>
    %102 = arith.addf %100, %101 : vector<40x128xf32>
    %cst_29 = arith.constant 0.000000e+00 : f32
    %103 = vector.broadcast %cst_29 : f32 to vector<48x128xf32>
    %c0_30 = arith.constant 0 : index
    %c0_31 = arith.constant 0 : index
    %104 = vector.load %arg7[%c0_30, %c0_31] : memref<48x128xf32, #tpu.memory_space<vmem>>, vector<48x128xf32>
    tpu.vector_store %arg7[%c0_30, %c0_31], %103 {strides = array<i32>} : memref<48x128xf32, #tpu.memory_space<vmem>>, vector<48x128xf32>,
    %c0_32 = arith.constant 0 : index
    %c0_33 = arith.constant 0 : index
    %105 = vector.load %arg7[%c0_32, %c0_33] : memref<48x128xf32, #tpu.memory_space<vmem>>, vector<40x128xf32>
    tpu.vector_store %arg7[%c0_32, %c0_33], %102 {strides = array<i32>} : memref<48x128xf32, #tpu.memory_space<vmem>>, vector<40x128xf32>,
    %c1 = arith.constant 1 : index
    %c0_34 = arith.constant 0 : index
    %106 = vector.load %arg7[%c1, %c0_34] : memref<48x128xf32, #tpu.memory_space<vmem>>, vector<40x128xf32>
    %c64_i32_35 = arith.constant 64 : i32
    %107 = tpu.dynamic_rotate %106 by %c64_i32_35 dim 1 : vector<40x128xf32>, i32 -> vector<40x128xf32>
    %108 = arith.addf %102, %107 : vector<40x128xf32>
    %109 = arith.truncf %108 : vector<40x128xf32> to vector<40x128xbf16>
    %cst_36 = arith.constant dense<0.000000e+00> : vector<40x128xf32>
    %110 = tpu.matmul %109, %7, %cst_36 {dimension_numbers = #tpu.dot_dimension_numbers<[1], [0], [0], [1], [0, 0, 1, 1], [], []>} : vector<40x128xbf16>, vector<128x128xbf16>, vector<40x128xf32> -> vector<40x128xf32>
    %111 = vector.broadcast %4 : vector<1x128xf32> to vector<40x128xf32>
    %112 = arith.addf %110, %111 : vector<40x128xf32>
    %cst_37 = arith.constant 0.000000e+00 : f32
    %113 = vector.broadcast %cst_37 : f32 to vector<40x128xf32>
    %114 = arith.maximumf %112, %113 : vector<40x128xf32>
    %115 = tpu.iota {dimensions = array<i32: 0>} : vector<8x40xi32>
    %116 = tpu.iota {dimensions = array<i32: 1>} : vector<8x40xi32>
    %c10_i32_38 = arith.constant 10 : i32
    %117 = vector.broadcast %c10_i32_38 : i32 to vector<8x40xi32>
    %118 = arith.muli %115, %117 : vector<8x40xi32>
    %119 = arith.cmpi sge, %116, %118 : vector<8x40xi32>
    %c10_i32_39 = arith.constant 10 : i32
    %120 = vector.broadcast %c10_i32_39 : i32 to vector<8x40xi32>
    %121 = arith.muli %115, %120 : vector<8x40xi32>
    %c8_i32_40 = arith.constant 8 : i32
    %122 = vector.broadcast %c8_i32_40 : i32 to vector<8x40xi32>
    %123 = arith.addi %121, %122 : vector<8x40xi32>
    %124 = arith.cmpi slt, %116, %123 : vector<8x40xi32>
    %125 = arith.andi %119, %124 : vector<8x40xi1>
    %126 = arith.extui %125 : vector<8x40xi1> to vector<8x40xi32>
    %127 = arith.sitofp %126 : vector<8x40xi32> to vector<8x40xf32>
    %cst_41 = arith.constant dense<0.000000e+00> : vector<8x128xf32>
    %128 = tpu.matmul %127, %114, %cst_41 {dimension_numbers = #tpu.dot_dimension_numbers<[1], [0], [0], [1], [0, 0, 1, 1], [], []>} : vector<8x40xf32>, vector<40x128xf32>, vector<8x128xf32> -> vector<8x128xf32>
    %cst_42 = arith.constant 1.250000e-01 : f32
    %129 = vector.broadcast %cst_42 : f32 to vector<8x128xf32>
    %130 = arith.mulf %128, %129 : vector<8x128xf32>
    %131 = arith.truncf %52 : vector<8x128xf32> to vector<8x128xbf16>
    %cst_43 = arith.constant dense<0.000000e+00> : vector<8x128xf32>
    %132 = tpu.matmul %131, %8, %cst_43 {dimension_numbers = #tpu.dot_dimension_numbers<[1], [0], [0], [1], [0, 0, 1, 1], [], []>} : vector<8x128xbf16>, vector<128x128xbf16>, vector<8x128xf32> -> vector<8x128xf32>
    %133 = arith.truncf %130 : vector<8x128xf32> to vector<8x128xbf16>
    %cst_44 = arith.constant dense<0.000000e+00> : vector<8x128xf32>
    %134 = tpu.matmul %133, %9, %cst_44 {dimension_numbers = #tpu.dot_dimension_numbers<[1], [0], [0], [1], [0, 0, 1, 1], [], []>} : vector<8x128xbf16>, vector<128x128xbf16>, vector<8x128xf32> -> vector<8x128xf32>
    %135 = arith.addf %132, %134 : vector<8x128xf32>
    %c0_45 = arith.constant 0 : index
    %c0_46 = arith.constant 0 : index
    %136 = vector.load %arg2[%c0_45, %c0_46] : memref<8x128xf32, #tpu.memory_space<vmem>>, vector<8x128xf32>
    %137 = arith.truncf %136 : vector<8x128xf32> to vector<8x128xbf16>
    %cst_47 = arith.constant dense<0.000000e+00> : vector<8x128xf32>
    %138 = tpu.matmul %137, %10, %cst_47 {dimension_numbers = #tpu.dot_dimension_numbers<[1], [0], [0], [1], [0, 0, 1, 1], [], []>} : vector<8x128xbf16>, vector<128x128xbf16>, vector<8x128xf32> -> vector<8x128xf32>
    %139 = arith.addf %135, %138 : vector<8x128xf32>
    %140 = vector.broadcast %5 : vector<1x128xf32> to vector<8x128xf32>
    %141 = arith.addf %139, %140 : vector<8x128xf32>
    %cst_48 = arith.constant 0.000000e+00 : f32
    %142 = vector.broadcast %cst_48 : f32 to vector<8x128xf32>
    %143 = arith.maximumf %141, %142 : vector<8x128xf32>
    %144 = arith.truncf %143 : vector<8x128xf32> to vector<8x128xbf16>
    %cst_49 = arith.constant dense<0.000000e+00> : vector<8x128xf32>
    %145 = tpu.matmul %144, %11, %cst_49 {dimension_numbers = #tpu.dot_dimension_numbers<[1], [0], [0], [1], [0, 0, 1, 1], [], []>} : vector<8x128xbf16>, vector<128x128xbf16>, vector<8x128xf32> -> vector<8x128xf32>
    %146 = vector.broadcast %6 : vector<1x128xf32> to vector<8x128xf32>
    %147 = arith.addf %145, %146 : vector<8x128xf32>
    %c0_50 = arith.constant 0 : index
    %c0_51 = arith.constant 0 : index
    %148 = vector.load %arg6[%c0_50, %c0_51] : memref<8x128xf32, #tpu.memory_space<vmem>>, vector<8x128xf32>
    tpu.vector_store %arg6[%c0_50, %c0_51], %147 {strides = array<i32>} : memref<8x128xf32, #tpu.memory_space<vmem>>, vector<8x128xf32>,
    return
  }
}

</mosaic_0001>

<bundles_post_ra>
// kernel: three_inputs_net_forward.1
= control target key start
LH: loop header
LB: loop body
LE: loop exit
PB: predicated region body
PF: predicated region fallthrough
CT: control target
= control target key end

     0   :  { %11 = vsyncpa [#allocation4], 0  ;;  %s1687_s21 = smov [#allocation3]   ;;  %s2002_s0 = inlined_call_operand.vmem [shape: s32[72,1], index: 0, kind: input, shape index: {}]   ;;  %s2003_s1 = inlined_call_operand.vmem [shape: s32[72,1], index: 1, kind: input, shape index: {}]   ;;  %s2004_s2 = inlined_call_operand.vmem [shape: f32[8,128], index: 2, kind: input, shape index: {}]   ;;  %s2005_s3 = inlined_call_operand.vmem [shape: bf16[128,256], index: 3, kind: input, shape index: {}]   ;;  %s2006_s4 = inlined_call_operand.hbm [shape: bf16[640,128], index: 4, kind: input, shape index: {}]   ;;  %s2007_s5 = inlined_call_operand.vmem [shape: f32[64,128], index: 5, kind: input, shape index: {}]   ;;  %s2008_s6 = inlined_call_operand.vmem [shape: f32[8,128], index: 6, kind: output, shape index: {}]  }
   0x1   :  { %s25_s22 = sshll.u32 %s1687_s21, 4  ;;  %s1663_s25 = scalar_lea.hbm %s2006_s4, 5120  ;;  %s26_s22 = int_to_ptr.vmem [resolvable:$true] %s25_s22 }
   0x2   :  { %p1664_p0 = scmp.ne.s32.totalorder %s2006_s4, %s1663_s25  ;;  %p1667_p1 = scmp.lt.u32.totalorder %s1663_s25, %s2006_s4 }
   0x4   :  { %p1669_p2 = pnand %p1667_p1, %p1664_p0 }
   0x6   :  { %1672 = shalt.err (!%p1669_p2)
}
   0x7   :  { %s1673_s30 = scalar_lea.vmem %s26_s22, 5120  ;;  %p1678_p4 = scmp.lt.s32.totalorder %s26_s22, %s26_s22 }
   0x8   :  { %p1674_p3 = scmp.ne.s32.totalorder %s26_s22, %s1673_s30  ;;  %p1679_p5 = scmp.lt.s32.totalorder %s1673_s30, %s1673_s30 }
   0xa   :  { %p1680_p6 = por %p1679_p5, %p1678_p4 }
   0xc   :  { %p1681_p7 = pnand %p1680_p6, %p1674_p3 }
   0xe   :  { %1684 = shalt.err (!%p1681_p7)
}
   0xf   :  { %s1688_s7 = smov 64   ;;  %s1689_s8 = smov 4  }
  0x10   :  { %31 = dma.hbm_to_vmem [thread:$0]  %s2006_s4, 5120, %s26_s22, [#allocation4], %s1688_s7, %s1688_s7, %s1689_s8  }
  0x11   :  { %1685 = dma.done.wait [#allocation4], 5120  }
  0x12   :  { %1686 = vsyncadd [#allocation4], 4294962176  ;;  %v1690_v0 = vmov 0   ;;  %v127_v1 = vld [vmem:[%s2002_s0] sm:$0xff]  ;;  %v173_v4 = vld [vmem:[%s2003_s1 + $0x8] sm:$0xff]  ;;  %v125_v44 = vlaneseq }
  0x13   :  { %1595 = vset.pattern.permute.xlu0 %v1690_v0  ;;  %1596 = vset.pattern.permute.xlu1 %v1690_v0  ;;  %v172_v2 = vld [vmem:[%s2003_s1] sm:$0xff]  ;;  %v128_v5 = vld [vmem:[%s2002_s0 + $0x8] sm:$0xff]  ;;  %v182_v6 = vadd.s32 64, %v173_v4  ;;  %v129_v7 = vld [vmem:[%s2002_s0 + $0x10] sm:$0xff]  ;;  %v1691_v52 = vmov 1.0|1.0  }
  0x14   :  { %386 = vmatprep.mubr.bf16.mxu0 %v1690_v0  ;;  %137 = vperm.xlu0 %1595, %v127_v1   ;;  %v181_v3 = vadd.s32 64, %v172_v2  ;;  %v174_v8 = vld [vmem:[%s2003_s1 + $0x10] sm:$0xff]  ;;  %v130_v9 = vld [vmem:[%s2002_s0 + $0x18] sm:$0xff]  ;;  %v1597_v10 = vld [vmem:[%s2005_s3 + $0x4] ss:$8 sps:$4 sm:$0xff]   ;;  %v1850_v45 = vand.u32 127, %v125_v44 }
  0x15   :  { %v1599_v11 = vld [vmem:[%s2005_s3] ss:$8 sps:$4 sm:$0xff]   ;;  %v175_v12 = vld [vmem:[%s2003_s1 + $0x18] sm:$0xff]  ;;  %354 = vmatprep.subr.bf16.mxu0 %v1597_v10  ;;  %v183_v14 = vadd.s32 64, %v174_v8  ;;  %v1603_v18 = vld [vmem:[%s2005_s3 + $0x24] ss:$8 sps:$4 sm:$0xff]  }
  0x16   :  { %191 = vperm.xlu1 %1596, %v181_v3   ;;  %v1600_v13 = vld [vmem:[%s2005_s3 + $0x14] ss:$8 sps:$4 sm:$0xff]   ;;  %v176_v15 = vld [vmem:[%s2003_s1 + $0x20] sm:$0xff]  ;;  %355 = vmatpush1.bf16.msra.mxu0 %v1599_v11  ;;  %v1602_v16 = vld [vmem:[%s2005_s3 + $0x10] ss:$8 sps:$4 sm:$0xff]   ;;  %v184_v19 = vadd.s32 64, %v175_v12 }
  0x17   :  { %v177_v17 = vld [vmem:[%s2003_s1 + $0x28] sm:$0xff]  ;;  %356 = vmatprep.subr.bf16.mxu0 %v1600_v13  ;;  %v178_v20 = vld [vmem:[%s2003_s1 + $0x30] sm:$0xff]  ;;  %v179_v21 = vld [vmem:[%s2003_s1 + $0x38] sm:$0xff]  ;;  %v185_v26 = vadd.s32 64, %v176_v15  ;;  %v1692_v2 = vmov 0.0|0.0   ;;  %v1693_v3 = vmov 0.0  }
  0x18   :  { %140 = vperm.xlu0 %1595, %v128_v5   ;;  %v180_v22 = vld [vmem:[%s2003_s1 + $0x40] sm:$0xff]  ;;  %v132_v25 = vld [vmem:[%s2002_s0 + $0x28] sm:$0xff]  ;;  %v1606_v27 = vld [vmem:[%s2005_s3 + $0x34] ss:$8 sps:$4 sm:$0xff]   ;;  %v186_v28 = vadd.s32 64, %v177_v17  ;;  %v187_v29 = vadd.s32 64, %v178_v20  ;;  %1575 = vmatprep.subr.bf16.mxu1 %v1692_v2 }
  0x19   :  { %v131_v23 = vld [vmem:[%s2002_s0 + $0x20] sm:$0xff]  ;;  %v188_v30 = vadd.s32 64, %v179_v21  ;;  %v189_v31 = vadd.s32 64, %v180_v22  ;;  %v1608_v32 = vld [vmem:[%s2005_s3 + $0x30] ss:$8 sps:$4 sm:$0xff]   ;;  %697 = vst [vmem:[#allocation2 + $0x28] sm:$0xff] %v1693_v3 }
  0x1a   :  { %194 = vperm.xlu1 %1596, %v182_v6   ;;  %357 = vmatpush1.bf16.msra.mxu0 %v1602_v16  ;;  %v1605_v24 = vld [vmem:[%s2005_s3 + $0x20] ss:$8 sps:$4 sm:$0xff]   ;;  %v1609_v33 = vld [vmem:[%s2005_s3 + $0x44] ss:$8 sps:$4 sm:$0xff]   ;;  %v133_v35 = vld [vmem:[%s2002_s0 + $0x30] sm:$0xff] }
  0x1b   :  { %358 = vmatprep.subr.bf16.mxu0 %v1603_v18  ;;  %v1611_v34 = vld [vmem:[%s2005_s3 + $0x40] ss:$8 sps:$4 sm:$0xff]   ;;  %v1612_v36 = vld [vmem:[%s2005_s3 + $0x54] ss:$8 sps:$4 sm:$0xff]   ;;  %v1614_v38 = vld [vmem:[%s2005_s3 + $0x50] ss:$8 sps:$4 sm:$0xff]  }
  0x1c   :  { %143 = vperm.xlu0 %1595, %v129_v7   ;;  %v134_v37 = vld [vmem:[%s2002_s0 + $0x38] sm:$0xff]  ;;  %v1615_v39 = vld [vmem:[%s2005_s3 + $0x64] ss:$8 sps:$4 sm:$0xff]   ;;  %v1617_v40 = vld [vmem:[%s2005_s3 + $0x60] ss:$8 sps:$4 sm:$0xff]   ;;  %v1885_v7 = vshrl.u32 %v125_v44, 7 }
  0x1d   :  { %v135_v41 = vld [vmem:[%s2002_s0 + $0x40] sm:$0xff]  ;;  %v1618_v42 = vld [vmem:[%s2005_s3 + $0x74] ss:$8 sps:$4 sm:$0xff]   ;;  %v1620_v43 = vld [vmem:[%s2005_s3 + $0x70] ss:$8 sps:$4 sm:$0xff]  }
  0x1e   :  { %146 = vperm.xlu1 %1596, %v130_v9   ;;  %359 = vmatpush1.bf16.msra.mxu0 %v1605_v24  ;;  %v454_v11 = vmul.u32 8, %v1885_v7  ;;  %v536_v22 = vadd.s32 8, %v1885_v7  ;;  %v1623_v44 = vld [vmem:[#allocation3 + $0x10] sm:$0xff]  }
  0x1f   :  { %360 = vmatprep.subr.bf16.mxu0 %v1606_v27  ;;  %v1331_v27 = vld [vmem:[%s2007_s5 + $0x8] ss:$0 sm:$0xff] }
  0x20   :  { %197 = vperm.xlu0 %1595, %v183_v14   ;;  %v456_v15 = vadd.s32 7, %v454_v11 }
  0x22   :  { %200 = vperm.xlu1 %1596, %v184_v19   ;;  %361 = vmatpush1.bf16.msra.mxu0 %v1608_v32 }
  0x23   :  { %362 = vmatprep.subr.bf16.mxu0 %v1609_v33 }
  0x24   :  { %149 = vperm.xlu0 %1595, %v131_v23  }
  0x26   :  { %152 = vperm.xlu1 %1596, %v132_v25   ;;  %363 = vmatpush1.bf16.msra.mxu0 %v1611_v34  ;;  %v538_v34 = vadd.s32 24, %v1885_v7 }
  0x27   :  { %364 = vmatprep.subr.bf16.mxu0 %v1612_v36 }
  0x28   :  { %203 = vperm.xlu0 %1595, %v185_v26  }
  0x2a   :  { %206 = vperm.xlu1 %1596, %v186_v28   ;;  %365 = vmatpush1.bf16.msra.mxu0 %v1614_v38  ;;  %v1622_v38 = vld [vmem:[#allocation3 + $0x8] sm:$0xff]  }
  0x2b   :  { %366 = vmatprep.subr.bf16.mxu0 %v1615_v39 }
  0x2c   :  { %155 = vperm.xlu0 %1595, %v133_v35  }
  0x2e   :  { %158 = vperm.xlu1 %1596, %v134_v37   ;;  %367 = vmatpush1.bf16.msra.mxu0 %v1617_v40 }
  0x2f   :  { %368 = vmatprep.subr.bf16.mxu0 %v1618_v42 }
  0x30   :  { %209 = vperm.xlu0 %1595, %v187_v29   ;;  %v537_v29 = vadd.s32 16, %v1885_v7 }
  0x32   :  { %212 = vperm.xlu1 %1596, %v188_v30   ;;  %369 = vmatpush1.bf16.msra.mxu0 %v1620_v43 }
  0x33   :  { %1495 = vmatprep.subr.bf16.mxu0 %v1693_v3 }
  0x34   :  { %161 = vperm.xlu0 %1595, %v135_v41  }
  0x36   :  { %215 = vperm.xlu1 %1596, %v189_v31   ;;  %v1621_v31 = vld [vmem:[#allocation3] sm:$0xff]  }
  0x93   :  { %v138_v46 = vpop.permute.xlu0 %137 }
  0x94   :  { %vm163_vm0 = vcmp.eq.s32.totalorder %v1850_v45, %v138_v46 }
  0x95   :  { %v192_v47 = vpop.permute.xlu1 %191 }
  0x96   :  { %vm217_vm1 = vcmp.eq.s32.totalorder %v1850_v45, %v192_v47 }
  0x97   :  { %v141_v48 = vpop.permute.xlu0 %140  ;;  %vm226_vm2 = vmor %vm163_vm0, %vm217_vm1 }
  0x98   :  { %vm164_vm3 = vcmp.eq.s32.totalorder %v1850_v45, %v141_v48 }
  0x99   :  { %v195_v49 = vpop.permute.xlu1 %194 }
  0x9a   :  { %vm218_vm4 = vcmp.eq.s32.totalorder %v1850_v45, %v195_v49 }
  0x9b   :  { %vm227_vm5 = vmor %vm164_vm3, %vm218_vm4  ;;  %v144_v50 = vpop.permute.xlu0 %143 }
  0x9c   :  { %vm1320_vm6 = vmpackc.low %vm227_vm5, %vm226_vm2  ;;  %vm165_vm8 = vcmp.eq.s32.totalorder %v1850_v45, %v144_v50 }
  0x9d   :  { %v147_v51 = vpop.permute.xlu1 %146  ;;  %1321 = vmatmul.mubr.msk.bf16.vlgmr.msra.gmra.mrb[0].mxu0 %vm1320_vm6, %v1691_v52 }
  0x9e   :  { %394 = vmatprep.mubr.bf16.mxu0 %v1690_v0  ;;  %vm166_vm9 = vcmp.eq.s32.totalorder %v1850_v45, %v147_v51 }
  0x9f   :  { %v198_v53 = vpop.permute.xlu0 %197 }
  0xa0   :  { %vm219_vm7 = vcmp.eq.s32.totalorder %v1850_v45, %v198_v53  ;;  %v539_v53 = vadd.s32 32, %v1885_v7 }
  0xa1   :  { %v201_v54 = vpop.permute.xlu1 %200  ;;  %vm228_vm10 = vmor %vm165_vm8, %vm219_vm7 }
  0xa2   :  { %vm220_vm11 = vcmp.eq.s32.totalorder %v1850_v45, %v201_v54 }
  0xa3   :  { %vm229_vm12 = vmor %vm166_vm9, %vm220_vm11  ;;  %v150_v55 = vpop.permute.xlu0 %149 }
  0xa4   :  { %vm1322_vm13 = vmpackc.low %vm229_vm12, %vm228_vm10  ;;  %vm167_vm15 = vcmp.eq.s32.totalorder %v1850_v45, %v150_v55  ;;  %v1624_v55 = vld [vmem:[#allocation3 + $0x18] sm:$0xff]  }
  0xa5   :  { %v153_v56 = vpop.permute.xlu1 %152  ;;  %1323 = vmatmul.mubr.msk.bf16.gmra.mrb[4].mxu0 %vm1322_vm13, %v1691_v52 }
  0xa6   :  { %402 = vmatprep.mubr.bf16.mxu0 %v1690_v0  ;;  %vm168_vm0 = vcmp.eq.s32.totalorder %v1850_v45, %v153_v56 }
  0xa7   :  { %v204_v57 = vpop.permute.xlu0 %203 }
  0xa8   :  { %vm221_vm14 = vcmp.eq.s32.totalorder %v1850_v45, %v204_v57 }
  0xa9   :  { %v207_v58 = vpop.permute.xlu1 %206  ;;  %vm230_vm1 = vmor %vm167_vm15, %vm221_vm14 }
  0xaa   :  { %vm222_vm2 = vcmp.eq.s32.totalorder %v1850_v45, %v207_v58 }
  0xab   :  { %vm231_vm3 = vmor %vm168_vm0, %vm222_vm2  ;;  %v156_v59 = vpop.permute.xlu0 %155  ;;  %vm1694_vm0 = vmmov 0   ;;  %vm457_vm2 = vcmp.lt.s32.totalorder %v1850_v45, %v456_v15 }
  0xac   :  { %vm1324_vm4 = vmpackc.low %vm231_vm3, %vm230_vm1  ;;  %vm169_vm6 = vcmp.eq.s32.totalorder %v1850_v45, %v156_v59  ;;  %1451 = vmatprep.mubr.msk.f32.mxu1 %vm1694_vm0, %v1693_v3  ;;  %vm455_vm1 = vcmp.ge.s32.totalorder %v1850_v45, %v454_v11  ;;  %v1627_v11 = vld [vmem:[#allocation3 + $0x30] sm:$0xff]  }
  0xad   :  { %v159_v60 = vpop.permute.xlu1 %158  ;;  %1325 = vmatmul.mubr.msk.bf16.gmra.mrb[8].mxu0 %vm1324_vm4, %v1691_v52  ;;  %vm458_vm3 = vmand %vm455_vm1, %vm457_vm2  ;;  %vm546_vm4 = vcmp.lt.s32.totalorder %v536_v22, 9 }
  0xae   :  { %410 = vmatprep.mubr.bf16.mxu0 %v1690_v0  ;;  %vm170_vm7 = vcmp.eq.s32.totalorder %v1850_v45, %v159_v60  ;;  %v1332_v30 = vsel %vm458_vm3, 1.0, %v1693_v3  ;;  %vm846_vm3 = vcmask 326656  }
  0xaf   :  { %v210_v61 = vpop.permute.xlu0 %209 }
  0xb0   :  { %vm223_vm5 = vcmp.eq.s32.totalorder %v1850_v45, %v210_v61 }
  0xb1   :  { %v213_v62 = vpop.permute.xlu1 %212  ;;  %vm232_vm8 = vmor %vm169_vm6, %vm223_vm5  ;;  %vm556_vm5 = vcmp.ge.s32.totalorder %v536_v22, 10  ;;  %vm461_vm6 = vcmask 261120  }
  0xb2   :  { %vm224_vm9 = vcmp.eq.s32.totalorder %v1850_v45, %v213_v62  ;;  %v1625_v62 = vld [vmem:[#allocation3 + $0x20] sm:$0xff]  }
  0xb3   :  { %vm233_vm10 = vmor %vm170_vm7, %vm224_vm9  ;;  %v162_v63 = vpop.permute.xlu0 %161  ;;  %vm572_vm9 = vcmp.ge.s32.totalorder %v537_v29, 20 }
  0xb4   :  { %vm1326_vm11 = vmpackc.low %vm233_vm10, %vm232_vm8  ;;  %vm171_vm13 = vcmp.eq.s32.totalorder %v1850_v45, %v162_v63  ;;  %vm562_vm8 = vcmp.lt.s32.totalorder %v537_v29, 19  ;;  %vm578_vm10 = vcmp.lt.s32.totalorder %v538_v34, 29 }
  0xb5   :  { %v216_v1 = vpop.permute.xlu1 %215  ;;  %1327 = vmatmul.mubr.msk.bf16.gmra.mrb[12].mxu0 %vm1326_vm11, %v1691_v52  ;;  %vm601_vm7 = vmor %vm546_vm4, %vm556_vm5  ;;  %vm588_vm11 = vcmp.ge.s32.totalorder %v538_v34, 30 }
  0xb6   :  { %vm225_vm12 = vcmp.eq.s32.totalorder %v1850_v45, %v216_v1  ;;  %418 = vmatprep.mubr.bf16.mxu0 %v1690_v0  ;;  %v1330_v0 = vld [vmem:[%s2007_s5] ss:$0 sm:$0xff]  ;;  %v1904_v37 = vsel %vm601_vm7, 1.0, %v1693_v3 }
  0xb7   :  { %vm234_vm14 = vmor %vm171_vm13, %vm225_vm12 }
  0xb8   :  { %vm1328_vm15 = vmpackc.low %vm234_vm14, %vm234_vm14  ;;  %vm594_vm14 = vcmp.lt.s32.totalorder %v539_v53, 39 }
  0xb9   :  { %vm607_vm12 = vmor %vm562_vm8, %vm572_vm9 }
  0xba   :  { %vm613_vm13 = vmor %vm578_vm10, %vm588_vm11  ;;  %v1335_v49 = vsel %vm607_vm12, 1.0, %v1693_v3 }
  0xbb   :  { %v1336_v54 = vsel %vm613_vm13, 1.0, %v1693_v3 }
  0xbd   :  { %1329 = vmatmul.mubr.msk.bf16.gmra.mrb[16].mxu0 %vm1328_vm15, %v1691_v52 }
  0xbe   :  { %1511 = vmatprep.mubr.msk.bf16.mxu0 %vm1694_vm0, %v1693_v3 }
 0x170   :  { %v388_v4 = vpop.f32.mrb[0].mxu0 }
 0x171   :  { %v430_v5 = vadd.f32 %v1330_v0, %v388_v4  ;;  %v390_v6 = vpop.f32.mrb[1].mxu0  ;;  %v1337_v4 = vsel %vm594_vm14, 1.0, %v1693_v3 }
 0x172   :  { %v391_v8 = vpop.f32.mrb[2].mxu0 }
 0x173   :  { %v431_v9 = vadd.f32 %v1330_v0, %v391_v8  ;;  %v393_v10 = vpop.f32.mrb[3].mxu0  ;;  %v434_v12 = vmax.f32 %v430_v5, 0.0  ;;  %v1626_v8 = vld [vmem:[#allocation3 + $0x28] sm:$0xff]  }
 0x175   :  { %v435_v13 = vmax.f32 %v431_v9, 0.0 }
 0x177   :  { %v1576_v14 = vpack.c.bf16 %v435_v13, %v434_v12 }
 0x178   :  { %v396_v16 = vpop.f32.mrb[4].mxu0 }
 0x179   :  { %v432_v17 = vadd.f32 %v1330_v0, %v396_v16  ;;  %v398_v18 = vpop.f32.mrb[5].mxu0  ;;  %1577 = vmatpush3.bf16.msra.mxu1 %v1576_v14 }
 0x17a   :  { %v399_v19 = vpop.f32.mrb[6].mxu0  ;;  %1578 = vmatprep.subr.bf16.mxu1 %v1692_v2 }
 0x17b   :  { %v433_v20 = vadd.f32 %v1330_v0, %v399_v19  ;;  %v401_v21 = vpop.f32.mrb[7].mxu0  ;;  %v436_v23 = vmax.f32 %v432_v17, 0.0 }
 0x17d   :  { %v437_v24 = vmax.f32 %v433_v20, 0.0 }
 0x17f   :  { %v1579_v25 = vpack.c.bf16 %v437_v24, %v436_v23 }
 0x180   :  { %v404_v26 = vpop.f32.mrb[8].mxu0 }
 0x181   :  { %v405_v28 = vpop.f32.mrb[9].mxu0  ;;  %1580 = vmatpush3.bf16.msra.mxu1 %v1579_v25 }
 0x182   :  { %v407_v32 = vpop.f32.mrb[10].mxu0  ;;  %1454 = vmatprep.subr.bf16.mxu1 %v1693_v3  ;;  %v1899_v35 = vadd.f32 %v1331_v27, %v405_v28 }
 0x183   :  { %v408_v33 = vpop.f32.mrb[11].mxu0 }
 0x184   :  { %v1901_v36 = vadd.f32 %v1331_v27, %v408_v33  ;;  %1452 = vmatmul.mubr.msk.f32.vlgmr.msra.gmra.mrb[0].mxu1 %vm461_vm6, %v1332_v30  ;;  %v447_v40 = vmax.f32 %v1899_v35, 0.0 }
 0x185   :  { %1455 = vmatpush3.bf16.msra.mxu1 %v1621_v31  ;;  %1470 = vmatprep.mubr.msk.bf16.mxu1 %vm1694_vm0, %v1693_v3 }
 0x186   :  { %v448_v39 = vmax.f32 %v1901_v36, 0.0  ;;  %1456 = vmatprep.subr.bf16.mxu1 %v1693_v3 }
 0x188   :  { %v626_v41 = vmul.f32 %v1904_v37, %v448_v39  ;;  %v412_v42 = vpop.f32.mrb[12].mxu0 }
 0x189   :  { %v413_v43 = vpop.f32.mrb[13].mxu0  ;;  %1457 = vmatpush3.bf16.msra.mxu1 %v1622_v38 }
 0x18a   :  { %v630_v46 = vadd.f32 %v626_v41, %v447_v40  ;;  %v444_v47 = vadd.f32 %v1331_v27, %v413_v43  ;;  %v415_v48 = vpop.f32.mrb[14].mxu0  ;;  %1458 = vmatprep.subr.bf16.mxu1 %v1693_v3 }
 0x18b   :  { %v416_v50 = vpop.f32.mrb[15].mxu0 }
 0x18c   :  { %v449_v51 = vmax.f32 %v444_v47, 0.0  ;;  %v445_v52 = vadd.f32 %v1331_v27, %v416_v50  ;;  %v1338_v47 = vld [vmem:[%s2007_s5 + $0x10] ss:$0 sm:$0xff] }
 0x18d   :  { %1459 = vmatpush3.bf16.msra.mxu1 %v1623_v44 }
 0x18e   :  { %v627_v56 = vmul.f32 %v1335_v49, %v449_v51  ;;  %v450_v57 = vmax.f32 %v445_v52, 0.0  ;;  %1460 = vmatprep.subr.bf16.mxu1 %v1693_v3  ;;  %v1339_v52 = vld [vmem:[%s2007_s5 + $0x18] ss:$0 sm:$0xff] }
 0x190   :  { %v631_v58 = vadd.f32 %v630_v46, %v627_v56  ;;  %v628_v59 = vmul.f32 %v1336_v54, %v450_v57  ;;  %v420_v60 = vpop.f32.mrb[16].mxu0 }
 0x191   :  { %v421_v61 = vpop.f32.mrb[17].mxu0  ;;  %1461 = vmatpush3.bf16.msra.mxu1 %v1624_v55 }
 0x192   :  { %v632_v63 = vadd.f32 %v631_v58, %v628_v59  ;;  %v446_v1 = vadd.f32 %v1331_v27, %v421_v61  ;;  %v423_v0 = vpop.f32.mrb[18].mxu0  ;;  %1462 = vmatprep.subr.bf16.mxu1 %v1693_v3 }
 0x193   :  { %v424_v5 = vpop.f32.mrb[19].mxu0 }
 0x194   :  { %v451_v6 = vmax.f32 %v446_v1, 0.0 }
 0x195   :  { %1463 = vmatpush3.bf16.msra.mxu1 %v1625_v62 }
 0x196   :  { %v629_v9 = vmul.f32 %v1337_v4, %v451_v6  ;;  %1464 = vmatprep.subr.bf16.mxu1 %v1693_v3 }
 0x198   :  { %v633_v10 = vadd.f32 %v632_v63, %v629_v9 }
 0x199   :  { %1465 = vmatpush3.bf16.msra.mxu1 %v1626_v8 }
 0x19a   :  { %v634_v12 = vrot.slane %v633_v10, 4  ;;  %1466 = vmatprep.subr.bf16.mxu1 %v1693_v3 }
 0x19c   :  { %v635_v13 = vadd.f32 %v634_v12, %v633_v10 }
 0x19d   :  { %1467 = vmatpush3.bf16.msra.mxu1 %v1627_v11 }
 0x19e   :  { %v636_v14 = vrot.slane %v635_v13, 2  ;;  %1468 = vmatprep.subr.bf16.mxu1 %v1693_v3 }
 0x1a0   :  { %v637_v15 = vadd.f32 %v636_v14, %v635_v13 }
 0x1a2   :  { %v638_v16 = vrot.slane %v637_v15, 1 }
 0x1a4   :  { %v639_v17 = vadd.f32 %v638_v16, %v637_v15 }
 0x1a6   :  { %v640_v18 = vmul.f32 0.027777778, %v639_v17 }
 0x1a8   :  { %v641_v19 = vsub.f32 %v447_v40, %v640_v18  ;;  %v642_v20 = vsub.f32 %v448_v39, %v640_v18  ;;  %v643_v21 = vsub.f32 %v449_v51, %v640_v18  ;;  %v644_v22 = vsub.f32 %v450_v57, %v640_v18 }
 0x1a9   :  { %v645_v23 = vsub.f32 %v451_v6, %v640_v18 }
 0x1aa   :  { %v647_v24 = vmul.f32 %v1904_v37, %v642_v20  ;;  %v648_v25 = vmul.f32 %v1335_v49, %v643_v21  ;;  %v649_v26 = vmul.f32 %v1336_v54, %v644_v22  ;;  %v651_v27 = vmul.f32 %v641_v19, %v641_v19  ;;  %v1628_v54 = vld [vmem:[#allocation3 + $0x38] sm:$0xff]  }
 0x1ab   :  { %v650_v29 = vmul.f32 %v1337_v4, %v645_v23  ;;  %1469 = vmatpush3.bf16.msra.mxu1 %v1628_v54 }
 0x1ac   :  { %v652_v28 = vmul.f32 %v647_v24, %v647_v24  ;;  %v653_v30 = vmul.f32 %v648_v25, %v648_v25  ;;  %v654_v32 = vmul.f32 %v649_v26, %v649_v26  ;;  %1581 = vmatprep.subr.bf16.mxu1 %v1692_v2  ;;  %v1637_v24 = vld [vmem:[#allocation3 + $0x80] sm:$0xff]   ;;  %v1638_v25 = vld [vmem:[#allocation3 + $0x88] sm:$0xff]   ;;  %v1639_v26 = vld [vmem:[#allocation3 + $0x90] sm:$0xff]  }
 0x1ad   :  { %v655_v34 = vmul.f32 %v650_v29, %v650_v29  ;;  %1496 = vmatpush3.bf16.msra.mxu0 %v1637_v24  ;;  %v1642_v29 = vld [vmem:[#allocation3 + $0xa8] sm:$0xff]  }
 0x1ae   :  { %v656_v31 = vadd.f32 %v652_v28, %v651_v27  ;;  %1497 = vmatprep.subr.bf16.mxu0 %v1693_v3  ;;  %v1640_v27 = vld [vmem:[#allocation3 + $0x98] sm:$0xff]   ;;  %v1641_v28 = vld [vmem:[#allocation3 + $0xa0] sm:$0xff]  }
 0x1b0   :  { %v657_v33 = vadd.f32 %v656_v31, %v653_v30  ;;  %v1643_v30 = vld [vmem:[#allocation3 + $0xb0] sm:$0xff]  }
 0x1b1   :  { %1498 = vmatpush3.bf16.msra.mxu0 %v1638_v25  ;;  %v1340_v31 = vld [vmem:[%s2007_s5 + $0x20] ss:$0 sm:$0xff]  ;;  %v1653_v25 = vld [vmem:[#allocation3 + $0x100] sm:$0xff]  }
 0x1b2   :  { %v658_v35 = vadd.f32 %v657_v33, %v654_v32  ;;  %1499 = vmatprep.subr.bf16.mxu0 %v1693_v3 }
 0x1b4   :  { %v659_v36 = vadd.f32 %v658_v35, %v655_v34 }
 0x1b5   :  { %1500 = vmatpush3.bf16.msra.mxu0 %v1639_v26  ;;  %v1654_v26 = vld [vmem:[#allocation3 + $0x108] sm:$0xff]  }
 0x1b6   :  { %v660_v38 = vrot.slane %v659_v36, 4  ;;  %1501 = vmatprep.subr.bf16.mxu0 %v1693_v3 }
 0x1b8   :  { %v661_v40 = vadd.f32 %v660_v38, %v659_v36 }
 0x1b9   :  { %1502 = vmatpush3.bf16.msra.mxu0 %v1640_v27  ;;  %v1655_v27 = vld [vmem:[#allocation3 + $0x110] sm:$0xff]  }
 0x1ba   :  { %v662_v39 = vrot.slane %v661_v40, 2  ;;  %1503 = vmatprep.subr.bf16.mxu0 %v1693_v3 }
 0x1bc   :  { %v663_v41 = vadd.f32 %v662_v39, %v661_v40 }
 0x1bd   :  { %1504 = vmatpush3.bf16.msra.mxu0 %v1641_v28  ;;  %v1656_v28 = vld [vmem:[#allocation3 + $0x118] sm:$0xff]  }
 0x1be   :  { %v664_v42 = vrot.slane %v663_v41, 1  ;;  %1505 = vmatprep.subr.bf16.mxu0 %v1693_v3 }
 0x1c0   :  { %v665_v43 = vadd.f32 %v664_v42, %v663_v41  ;;  %v839_v41 = vmul.u32 10, %v1885_v7 }
 0x1c1   :  { %1506 = vmatpush3.bf16.msra.mxu0 %v1642_v29  ;;  %v1657_v29 = vld [vmem:[#allocation3 + $0x120] sm:$0xff]  }
 0x1c2   :  { %v666_v44 = vmul.f32 0.027777778, %v665_v43  ;;  %1507 = vmatprep.subr.bf16.mxu0 %v1693_v3  ;;  %vm840_vm15 = vcmp.ge.s32.totalorder %v1850_v45, %v839_v41 }
 0x1c4   :  { %v667_v37 = vadd.f32 1e-05, %v666_v44 }
 0x1c5   :  { %1508 = vmatpush3.bf16.msra.mxu0 %v1643_v30  ;;  %v1658_v30 = vld [vmem:[#allocation3 + $0x128] sm:$0xff]  }
 0x1c6   :  { %1661 = vrsqrt.f32 %v667_v37  ;;  %1509 = vmatprep.subr.bf16.mxu0 %v1693_v3 }
 0x1d0   :  { %v1662_v46 = vpop.eup %1661 }
 0x1d1   :  { %v669_v48 = vmul.f32 %v1662_v46, %v641_v19  ;;  %v670_v49 = vmul.f32 %v1662_v46, %v642_v20  ;;  %v671_v50 = vmul.f32 %v1662_v46, %v643_v21  ;;  %v672_v51 = vmul.f32 %v1662_v46, %v644_v22 }
 0x1d2   :  { %v673_v53 = vmul.f32 %v1662_v46, %v645_v23  ;;  %v841_v46 = vadd.s32 8, %v839_v41 }
 0x1d3   :  { %v678_v55 = vmul.f32 %v1338_v47, %v669_v48  ;;  %v679_v56 = vmul.f32 %v1338_v47, %v670_v49  ;;  %v680_v57 = vmul.f32 %v1338_v47, %v671_v50  ;;  %v681_v58 = vmul.f32 %v1338_v47, %v672_v51 }
 0x1d4   :  { %v682_v59 = vmul.f32 %v1338_v47, %v673_v53  ;;  %vm842_vm1 = vcmp.lt.s32.totalorder %v1850_v45, %v841_v46  ;;  %v1630_v45 = vld [vmem:[#allocation3 + $0x48] sm:$0xff]  }
 0x1d5   :  { %v687_v60 = vadd.f32 %v1339_v52, %v678_v55  ;;  %v688_v61 = vadd.f32 %v1339_v52, %v679_v56  ;;  %v689_v62 = vadd.f32 %v1339_v52, %v680_v57  ;;  %v690_v63 = vadd.f32 %v1339_v52, %v681_v58  ;;  %vm843_vm2 = vmand %vm840_vm15, %vm842_vm1  ;;  %v1629_v58 = vld [vmem:[#allocation3 + $0x40] sm:$0xff]  }
 0x1d6   :  { %v691_v1 = vadd.f32 %v1339_v52, %v682_v59  ;;  %v1631_v59 = vld [vmem:[#allocation3 + $0x50] sm:$0xff]  }
 0x1d7   :  { %698 = vst [vmem:[#allocation2] sm:$0xff] %v687_v60  ;;  %699 = vst [vmem:[#allocation2 + $0x8] sm:$0xff] %v688_v61 }
 0x1d8   :  { %700 = vst [vmem:[#allocation2 + $0x10] sm:$0xff] %v689_v62  ;;  %701 = vst [vmem:[#allocation2 + $0x18] sm:$0xff] %v690_v63 }
 0x1d9   :  { %702 = vst [vmem:[#allocation2 + $0x20] sm:$0xff] %v691_v1 }
 0x1de   :  { %v703_v4 = vld [vmem:[#allocation2 + $0x1] sm:$0xff] }
 0x1df   :  { %v704_v0 = vld [vmem:[#allocation2 + $0x9] sm:$0xff]  ;;  %708 = vrot.lane.b32.xlu0 %v703_v4, %s1688_s7  ;;  %v705_v6 = vld [vmem:[#allocation2 + $0x11] sm:$0xff] }
 0x1e0   :  { %710 = vrot.lane.b32.xlu1 %v704_v0, %s1688_s7  ;;  %v706_v5 = vld [vmem:[#allocation2 + $0x19] sm:$0xff]  ;;  %v707_v8 = vld [vmem:[#allocation2 + $0x21] sm:$0xff] }
 0x1e3   :  { %712 = vrot.lane.b32.xlu0 %v705_v6, %s1688_s7 }
 0x1e4   :  { %714 = vrot.lane.b32.xlu1 %v706_v5, %s1688_s7  ;;  %v1644_v5 = vld [vmem:[#allocation3 + $0xb8] sm:$0xff]  }
 0x1e5   :  { %1510 = vmatpush3.bf16.msra.mxu0 %v1644_v5 }
 0x1e6   :  { %1535 = vmatprep.subr.bf16.mxu0 %v1693_v3 }
 0x1e7   :  { %716 = vrot.lane.b32.xlu0 %v707_v8, %s1688_s7 }
 0x251   :  { %v709_v10 = vpop.permute.xlu0 %708 }
 0x252   :  { %v711_v9 = vpop.permute.xlu1 %710  ;;  %v718_v12 = vadd.f32 %v709_v10, %v687_v60  ;;  %v1632_v60 = vld [vmem:[#allocation3 + $0x58] sm:$0xff]   ;;  %v1645_v10 = vld [vmem:[#allocation3 + $0xc0] sm:$0xff]  }
 0x253   :  { %v719_v11 = vadd.f32 %v711_v9, %v688_v61  ;;  %v1633_v61 = vld [vmem:[#allocation3 + $0x60] sm:$0xff]  }
 0x255   :  { %v723_v13 = vpack.c.bf16 %v719_v11, %v718_v12  ;;  %v713_v15 = vpop.permute.xlu0 %712  ;;  %v1646_v12 = vld [vmem:[#allocation3 + $0xc8] sm:$0xff]  }
 0x256   :  { %v715_v14 = vpop.permute.xlu1 %714  ;;  %v720_v18 = vadd.f32 %v713_v15, %v689_v62  ;;  %v1634_v62 = vld [vmem:[#allocation3 + $0x68] sm:$0xff]   ;;  %v1649_v15 = vld [vmem:[#allocation3 + $0xe0] sm:$0xff]  }
 0x257   :  { %1471 = vmatmul.mubr.bf16.vlgmr.msra.gmra.mrb[4].mxu1 %v723_v13  ;;  %v1937_v16 = vpop.f32.mrb[0].mxu1  ;;  %v721_v17 = vadd.f32 %v715_v14, %v690_v63  ;;  %v1635_v63 = vld [vmem:[#allocation3 + $0x70] sm:$0xff]   ;;  %v1648_v14 = vld [vmem:[#allocation3 + $0xd8] sm:$0xff]  }
 0x258   :  { %1474 = vmatprep.mubr.msk.bf16.mxu1 %vm1694_vm0, %v1693_v3  ;;  %v1453_v19 = vpop.f32.mrb[1].mxu1  ;;  %v535_v0 = vmul.f32 0.14285715, %v1937_v16  ;;  %v1647_v13 = vld [vmem:[#allocation3 + $0xd0] sm:$0xff]   ;;  %v1650_v16 = vld [vmem:[#allocation3 + $0xe8] sm:$0xff]  }
 0x259   :  { %v724_v20 = vpack.c.bf16 %v721_v17, %v720_v18  ;;  %v717_v21 = vpop.permute.xlu0 %716  ;;  %v1651_v17 = vld [vmem:[#allocation3 + $0xf0] sm:$0xff]   ;;  %v1652_v18 = vld [vmem:[#allocation3 + $0xf8] sm:$0xff]  }
 0x25a   :  { %v722_v22 = vadd.f32 %v717_v21, %v691_v1  ;;  %v1636_v1 = vld [vmem:[#allocation3 + $0x78] sm:$0xff]   ;;  %v921_v4 = vpack.c.bf16 %v535_v0, %v535_v0  ;;  %v1099_v19 = vld [vmem:[%s2004_s2] sm:$0xff] }
 0x25c   :  { %v725_v23 = vpack.c.bf16 %v722_v22, %v722_v22  ;;  %v1100_v22 = vpack.c.bf16 %v1099_v19, %v1099_v19 }
 0x25f   :  { %1475 = vmatmul.mubr.bf16.gmra.mrb[8].mxu1 %v724_v20 }
 0x260   :  { %1478 = vmatprep.mubr.msk.bf16.mxu1 %vm1694_vm0, %v1693_v3 }
 0x267   :  { %1479 = vmatmul.mubr.bf16.gmra.mrb[12].mxu1 %v725_v23 }
 0x268   :  { %1492 = vmatprep.mubr.msk.f32.mxu1 %vm1694_vm0, %v1693_v3 }
 0x32a   :  { %v812_v32 = vpop.f32.mrb[4].mxu1 }
 0x32b   :  { %v813_v33 = vadd.f32 %v1340_v31, %v812_v32  ;;  %v1472_v34 = vpop.f32.mrb[5].mxu1  ;;  %v1660_v32 = vld [vmem:[#allocation3 + $0x138] sm:$0xff]  }
 0x32c   :  { %v815_v35 = vpop.f32.mrb[6].mxu1 }
 0x32d   :  { %v816_v36 = vadd.f32 %v1340_v31, %v815_v35  ;;  %v1473_v38 = vpop.f32.mrb[7].mxu1  ;;  %v834_v40 = vmax.f32 %v813_v33, 0.0 }
 0x32f   :  { %v835_v39 = vmax.f32 %v816_v36, 0.0 }
 0x331   :  { %v1582_v42 = vpack.c.bf16 %v835_v39, %v834_v40  ;;  %v1375_v40 = vld [vmem:[%s2007_s5 + $0x28] ss:$0 sm:$0xff] }
 0x332   :  { %v820_v43 = vpop.f32.mrb[8].mxu1 }
 0x333   :  { %v821_v44 = vadd.f32 %v1340_v31, %v820_v43  ;;  %v1476_v37 = vpop.f32.mrb[9].mxu1  ;;  %1583 = vmatpush3.bf16.msra.mxu1 %v1582_v42 }
 0x334   :  { %v823_v47 = vpop.f32.mrb[10].mxu1  ;;  %1584 = vmatprep.subr.bf16.mxu1 %v1692_v2  ;;  %v1349_v2 = vsel %vm843_vm2, 1.0, %v1693_v3 }
 0x335   :  { %v824_v48 = vadd.f32 %v1340_v31, %v823_v47  ;;  %v1477_v49 = vpop.f32.mrb[11].mxu1  ;;  %v836_v50 = vmax.f32 %v821_v44, 0.0 }
 0x337   :  { %v837_v51 = vmax.f32 %v824_v48, 0.0 }
 0x339   :  { %v1585_v52 = vpack.c.bf16 %v837_v51, %v836_v50 }
 0x33a   :  { %v828_v53 = vpop.f32.mrb[12].mxu1 }
 0x33b   :  { %v829_v7 = vadd.f32 %v1340_v31, %v828_v53  ;;  %v1480_v54 = vpop.f32.mrb[13].mxu1  ;;  %1586 = vmatpush3.bf16.msra.mxu1 %v1585_v52  ;;  %v1659_v31 = vld [vmem:[#allocation3 + $0x130] sm:$0xff]  }
 0x33c   :  { %v831_v55 = vpop.f32.mrb[14].mxu1  ;;  %1490 = vmatprep.subr.mxu1 %v1693_v3 }
 0x33d   :  { %v838_v56 = vmax.f32 %v829_v7, 0.0  ;;  %v1481_v57 = vpop.f32.mrb[15].mxu1 }
 0x33f   :  { %1491 = vmatpush3.msra.mxu1 %v838_v56 }
 0x340   :  { %1493 = vmatmul.mubr.msk.f32.vlgmr.msra.gmra.mrb[2].mxu1 %vm846_vm3, %v1349_v2  ;;  %1515 = vmatprep.subr.bf16.mxu1 %v1693_v3 }
 0x341   :  { %1516 = vmatpush3.bf16.msra.mxu1 %v1629_v58  ;;  %1531 = vmatprep.mubr.msk.bf16.mxu1 %vm1694_vm0, %v1693_v3 }
 0x342   :  { %1517 = vmatprep.subr.bf16.mxu1 %v1693_v3 }
 0x345   :  { %1518 = vmatpush3.bf16.msra.mxu1 %v1630_v45 }
 0x346   :  { %1519 = vmatprep.subr.bf16.mxu1 %v1693_v3 }
 0x349   :  { %1520 = vmatpush3.bf16.msra.mxu1 %v1631_v59 }
 0x34a   :  { %1521 = vmatprep.subr.bf16.mxu1 %v1693_v3 }
 0x34d   :  { %1522 = vmatpush3.bf16.msra.mxu1 %v1632_v60 }
 0x34e   :  { %1523 = vmatprep.subr.bf16.mxu1 %v1693_v3 }
 0x351   :  { %1524 = vmatpush3.bf16.msra.mxu1 %v1633_v61 }
 0x352   :  { %1525 = vmatprep.subr.bf16.mxu1 %v1693_v3 }
 0x355   :  { %1526 = vmatpush3.bf16.msra.mxu1 %v1634_v62 }
 0x356   :  { %1527 = vmatprep.subr.bf16.mxu1 %v1693_v3 }
 0x359   :  { %1528 = vmatpush3.bf16.msra.mxu1 %v1635_v63 }
 0x35a   :  { %1529 = vmatprep.subr.bf16.mxu1 %v1693_v3 }
 0x35d   :  { %1530 = vmatpush3.bf16.msra.mxu1 %v1636_v1 }
 0x35e   :  { %1555 = vmatprep.subr.bf16.mxu1 %v1693_v3 }
 0x360   :  { %1532 = vmatmul.mubr.bf16.vlgmr.msra.gmra.mrb[16].mxu1 %v921_v4 }
 0x361   :  { %1571 = vmatprep.mubr.msk.bf16.mxu1 %vm1694_vm0, %v1693_v3  ;;  %1556 = vmatpush3.bf16.msra.mxu1 %v1653_v25 }
 0x362   :  { %1557 = vmatprep.subr.bf16.mxu1 %v1693_v3 }
 0x365   :  { %1558 = vmatpush3.bf16.msra.mxu1 %v1654_v26 }
 0x366   :  { %1559 = vmatprep.subr.bf16.mxu1 %v1693_v3 }
 0x369   :  { %1560 = vmatpush3.bf16.msra.mxu1 %v1655_v27 }
 0x36a   :  { %1561 = vmatprep.subr.bf16.mxu1 %v1693_v3 }
 0x36d   :  { %1562 = vmatpush3.bf16.msra.mxu1 %v1656_v28 }
 0x36e   :  { %1563 = vmatprep.subr.bf16.mxu1 %v1693_v3 }
 0x371   :  { %1564 = vmatpush3.bf16.msra.mxu1 %v1657_v29 }
 0x372   :  { %1565 = vmatprep.subr.bf16.mxu1 %v1693_v3 }
 0x375   :  { %1566 = vmatpush3.bf16.msra.mxu1 %v1658_v30 }
 0x376   :  { %1567 = vmatprep.subr.bf16.mxu1 %v1693_v3 }
 0x379   :  { %1568 = vmatpush3.bf16.msra.mxu1 %v1659_v31 }
 0x37a   :  { %1569 = vmatprep.subr.bf16.mxu1 %v1693_v3 }
 0x37d   :  { %1570 = vmatpush3.bf16.msra.mxu1 %v1660_v32 }
 0x413   :  { %v916_v6 = vpop.f32.mrb[2].mxu1 }
 0x414   :  { %v920_v8 = vmul.f32 0.125, %v916_v6  ;;  %v1494_v9 = vpop.f32.mrb[3].mxu1 }
 0x416   :  { %v922_v11 = vpack.c.bf16 %v920_v8, %v920_v8 }
 0x418   :  { %1512 = vmatmul.mubr.bf16.vlgmr.msra.gmra.mrb[20].mxu0 %v922_v11 }
 0x419   :  { %1536 = vmatpush3.bf16.msra.mxu0 %v1645_v10  ;;  %1551 = vmatprep.mubr.msk.bf16.mxu0 %vm1694_vm0, %v1693_v3 }
 0x41a   :  { %1537 = vmatprep.subr.bf16.mxu0 %v1693_v3 }
 0x41d   :  { %1538 = vmatpush3.bf16.msra.mxu0 %v1646_v12 }
 0x41e   :  { %1539 = vmatprep.subr.bf16.mxu0 %v1693_v3 }
 0x421   :  { %1540 = vmatpush3.bf16.msra.mxu0 %v1647_v13 }
 0x422   :  { %1541 = vmatprep.subr.bf16.mxu0 %v1693_v3 }
 0x425   :  { %1542 = vmatpush3.bf16.msra.mxu0 %v1648_v14 }
 0x426   :  { %1543 = vmatprep.subr.bf16.mxu0 %v1693_v3 }
 0x429   :  { %1544 = vmatpush3.bf16.msra.mxu0 %v1649_v15 }
 0x42a   :  { %1545 = vmatprep.subr.bf16.mxu0 %v1693_v3 }
 0x42d   :  { %1546 = vmatpush3.bf16.msra.mxu0 %v1650_v16 }
 0x42e   :  { %1547 = vmatprep.subr.bf16.mxu0 %v1693_v3 }
 0x431   :  { %1548 = vmatpush3.bf16.msra.mxu0 %v1651_v17 }
 0x432   :  { %1549 = vmatprep.subr.bf16.mxu0 %v1693_v3  ;;  %v1376_v3 = vld [vmem:[%s2007_s5 + $0x30] ss:$0 sm:$0xff] }
 0x433   :  { %v1093_v20 = vpop.f32.mrb[16].mxu1 }
 0x434   :  { %v1533_v21 = vpop.f32.mrb[17].mxu1 }
 0x435   :  { %1550 = vmatpush3.bf16.msra.mxu0 %v1652_v18  ;;  %v1096_v23 = vpop.f32.mrb[18].mxu1 }
 0x436   :  { %v1534_v24 = vpop.f32.mrb[19].mxu1 }
 0x438   :  { %1552 = vmatmul.mubr.bf16.vlgmr.msra.gmra.mrb[24].mxu0 %v1100_v22 }
 0x4eb   :  { %v1005_v33 = vpop.f32.mrb[20].mxu0 }
 0x4ec   :  { %v1094_v34 = vadd.f32 %v1093_v20, %v1005_v33  ;;  %v1513_v35 = vpop.f32.mrb[21].mxu0 }
 0x4ed   :  { %v1008_v36 = vpop.f32.mrb[22].mxu0 }
 0x4ee   :  { %v1514_v38 = vpop.f32.mrb[23].mxu0 }
 0x50b   :  { %v1183_v39 = vpop.f32.mrb[24].mxu0 }
 0x50c   :  { %v1189_v41 = vadd.f32 %v1183_v39, %v1094_v34  ;;  %v1553_v42 = vpop.f32.mrb[25].mxu0 }
 0x50d   :  { %v1186_v43 = vpop.f32.mrb[26].mxu0 }
 0x50e   :  { %v1194_v44 = vadd.f32 %v1375_v40, %v1189_v41  ;;  %v1554_v37 = vpop.f32.mrb[27].mxu0 }
 0x510   :  { %v1195_v46 = vmax.f32 %v1194_v44, 0.0 }
 0x512   :  { %v1196_v47 = vpack.c.bf16 %v1195_v46, %v1195_v46 }
 0x514   :  { %1572 = vmatmul.mubr.bf16.vlgmr.msra.gmra.mrb[20].mxu1 %v1196_v47 }
 0x5e7   :  { %v1283_v48 = vpop.f32.mrb[20].mxu1 }
 0x5e8   :  { %v1284_v49 = vadd.f32 %v1376_v3, %v1283_v48  ;;  %v1573_v50 = vpop.f32.mrb[21].mxu1 }
 0x5e9   :  { %v1286_v51 = vpop.f32.mrb[22].mxu1 }
 0x5ea   :  { %1289 = vst [vmem:[%s2008_s6] sm:$0xff] %v1284_v49  ;;  %v1574_v52 = vpop.f32.mrb[23].mxu1 }
 0x5eb   :  { %1294 = vsyncpa [#allocation4], 1 }

</bundles_post_ra>
